<compile_context>
chip_gen: v7x
topology: tpu7x:2x2x1
jax: 0.10.0
libtpu: 0.0.40
codegen_flags: <defaults>
</compile_context>

<pallas_src>
import jax
import jax.numpy as jnp
from jax import lax
from jax.experimental import pallas as pl
from jax.experimental.pallas import tpu as pltpu


# --------------------------------------------------------------------------
# Kernels
# --------------------------------------------------------------------------
def _fused_kernel(x_ref, w_ref, b_ref, o_ref):
    # x_ref: (TR, 128) f32 -- 128/F samples per row, features interleaved along
    #        lanes exactly as they sit in row-major HBM (no transpose anywhere).
    # w_ref: (128, G) f32 with W[F*j + k, j] = weight[k]; the matmul
    #        deinterleaves and contracts the features in one MXU pass
    #        (hidden under the DMA -- this kernel is HBM-bound).
    # b_ref: (1,) SMEM scalar bias.
    # o_ref: (TR, G) f32; G equals the output's full minor dim, so both the
    #        VMEM stores and the HBM writeback block are dense/contiguous.
    y = jnp.dot(x_ref[...], w_ref[...],
                preferred_element_type=jnp.float32,
                precision=lax.Precision.HIGHEST)
    o_ref[...] = (y + b_ref[0]).astype(o_ref.dtype)


def _feature_major_kernel(w_ref, b_ref, xt_ref, o_ref):
    # xt_ref: (F, TB) VMEM  -- batch rides the 128-wide lane axis.
    # w_ref : (F,)  SMEM scalars (no padded (8,128) weight tile, no broadcast,
    #         no cross-sublane reduce -- just an unrolled VPU multiply-add).
    # b_ref : (1,)  SMEM scalar bias.
    # o_ref : (1, TB) lane-dense output row.
    acc = xt_ref[0:1, :] * w_ref[0]
    for k in range(1, xt_ref.shape[0]):
        acc = acc + xt_ref[k:k + 1, :] * w_ref[k]
    o_ref[...] = (acc + b_ref[0]).astype(o_ref.dtype)


# --------------------------------------------------------------------------
# Tile-sizing helpers (padded-VMEM aware, per chip generation)
# --------------------------------------------------------------------------
def _round_up(x, m):
    return -(-x // m) * m


def _vmem_budget():
    """Returns (tile_byte_budget, vmem_limit_bytes) for this chip generation."""
    try:
        cap = int(pltpu.get_tpu_info().vmem_capacity_bytes)
    except Exception:
        cap = 64 * 1024 * 1024                   # conservative (v7x-sized)
    if cap >= 96 * 1024 * 1024:                  # v5e / v6e: 128 MiB physical
        return 48 * 1024 * 1024, 64 * 1024 * 1024
    # v7x: 64 MiB physical per TensorCore -> keep double-buffered tiles ~24 MiB
    return 24 * 1024 * 1024, 40 * 1024 * 1024


def _pick_num_units(n_units, max_units):
    """Tile size (in alignment quanta) for a 1-D streaming grid.

    Picks the largest tile that (a) fits the double-buffered VMEM budget,
    (b) yields >= 2 grid steps whenever the problem allows it (feeds both v7x
    TensorCores, overlaps DMA with compute), and (c) wastes <~6% of traffic on
    padding the last step.
    """
    if n_units <= 1:
        return 1
    steps = max(2, -(-n_units // max_units))
    steps += steps % 2                           # prefer an even step count
    while True:
        tile = -(-n_units // steps)
        if tile <= max_units and (tile * steps - n_units) * 16 <= n_units:
            return tile
        if tile <= 1:
            return 1
        steps += 1


# --------------------------------------------------------------------------
# Forward wrappers
# --------------------------------------------------------------------------
def _fused_small_f_forward(x, weight, bias, *, row_tile=None):
    """Row-major x (N, F) with F | 128: no transpose, no extra HBM passes."""
    n, f = x.shape
    assert 128 % f == 0
    g = 128 // f                                  # samples per 128-lane row
    out_dtype = jnp.result_type(x.dtype, weight.dtype)

    tile_budget, vmem_limit = _vmem_budget()
    # Padded VMEM bytes per 128-lane row per step: x block (TR,128) f32 plus
    # output block (TR, G) lane-padded to 128, each double-buffered.
    bytes_per_row = (128 + 128) * 4 * 2
    max_units = max(1, (tile_budget - (1 << 20)) // (bytes_per_row * 8))

    rows_needed = pl.cdiv(n, g)
    if row_tile is None:
        row_tile = 8 * _pick_num_units(pl.cdiv(rows_needed, 8), max_units)
    assert row_tile % 8 == 0
    rows = _round_up(rows_needed, row_tile)
    n_pad = rows * g
    if n_pad != n:
        # Pad so every grid step is a full lane-dense (row_tile, 128) block;
        # padded samples evaluate to `bias` and are sliced off below.
        x = jnp.pad(x, ((0, n_pad - n), (0, 0)))
    xv = x.reshape(rows, 128)                     # contiguous reinterpret

    # (128, G) deinterleave/contract matrix: W[F*j + k, j] = weight[k].
    w_mat = jnp.kron(jnp.eye(g, dtype=out_dtype),
                     weight.reshape(f, 1).astype(out_dtype))

    out = pl.pallas_call(
        _fused_kernel,
        out_shape=jax.ShapeDtypeStruct((rows, g), out_dtype),
        grid=(rows // row_tile,),
        in_specs=[
            pl.BlockSpec((row_tile, 128), lambda i: (i, 0)),      # x rows
            pl.BlockSpec((128, g), lambda i: (0, 0)),             # W (resident)
            pl.BlockSpec(memory_space=pltpu.MemorySpace.SMEM),    # bias scalar
        ],
        out_specs=pl.BlockSpec((row_tile, g), lambda i: (i, 0)),
        compiler_params=pltpu.CompilerParams(
            dimension_semantics=("parallel",),    # shard batch across TCs
            vmem_limit_bytes=vmem_limit,
        ),
    )(xv, w_mat, bias)

    y = out.reshape(n_pad, 1)
    return y[:n] if n_pad != n else y


def linear_net_forward_feature_major(xt, weight, bias, *, col_tile=None):
    """y = xt.T @ weight.T + bias for feature-major xt of shape (F, N).

    Memory-optimal entry point for general F: keep x in (F, N) layout across
    training steps so no per-call transpose / extra HBM pass is needed.
    """
    f, n = xt.shape
    assert weight.shape == (1, f) and bias.shape == (1,)
    out_dtype = jnp.result_type(xt.dtype, weight.dtype)

    tile_budget, vmem_limit = _vmem_budget()
    # Padded VMEM bytes per lane-column per step: x block sublane-padded to
    # round_up(F,8), (1,TB) output block sublane-padded to 8, double-buffered.
    bytes_per_lane = (_round_up(f, 8) + 8) * 4 * 2
    max_units = max(1, (tile_budget - (1 << 20)) // (bytes_per_lane * 128))
    if col_tile is None:
        col_tile = 128 * _pick_num_units(pl.cdiv(n, 128), max_units)
    assert col_tile % 128 == 0
    n_pad = _round_up(n, col_tile)
    if n_pad != n:
        xt = jnp.pad(xt, ((0, 0), (0, n_pad - n)))

    y_row = pl.pallas_call(
        _feature_major_kernel,
        out_shape=jax.ShapeDtypeStruct((1, n_pad), out_dtype),
        grid=(n_pad // col_tile,),
        in_specs=[
            pl.BlockSpec(memory_space=pltpu.MemorySpace.SMEM),    # weights
            pl.BlockSpec(memory_space=pltpu.MemorySpace.SMEM),    # bias
            pl.BlockSpec((f, col_tile), lambda i: (0, i)),        # x tile
        ],
        out_specs=pl.BlockSpec((1, col_tile), lambda i: (0, i)),
        compiler_params=pltpu.CompilerParams(
            dimension_semantics=("parallel",),
            vmem_limit_bytes=vmem_limit,
        ),
    )(weight.reshape(f), bias, xt)

    y = y_row.reshape(n_pad, 1)
    return y[:n] if n_pad != n else y


def linear_net_forward(x, weight, bias, *, row_tile=None, col_tile=None):
    """y = x @ weight.T + bias  (semantics of nn.Linear(n_feature, 1))."""
    n, f = x.shape
    assert weight.shape == (1, f) and bias.shape == (1,)
    if 128 % f == 0:
        # Common tiny-F case (the original script uses F=2): fused row-major
        # path, zero extra HBM traffic.
        return _fused_small_f_forward(x, weight, bias, row_tile=row_tile)
    # General F: prefer keeping x feature-major across training steps and
    # calling linear_net_forward_feature_major directly; this convenience
    # path pays a one-off transpose (one extra HBM pass over x).
    return linear_net_forward_feature_major(x.T, weight, bias, col_tile=col_tile)


# --------------------------------------------------------------------------
# Demo / self-check
# --------------------------------------------------------------------------
if __name__ == "__main__":
    key = jax.random.PRNGKey(0)
    kx, kw, kb, kx2, kw2, kb2 = jax.random.split(key, 6)

    # ---- n_feature = 2, as in the original linear-regression script ----
    n_feature = 2
    batch = 1000                      # deliberately not 128-aligned (pad path)
    bound = 1.0 / (n_feature ** 0.5)  # nn.Linear default init range
    weight = jax.random.uniform(kw, (1, n_feature), jnp.float32, -bound, bound)
    bias = jax.random.uniform(kb, (1,), jnp.float32, -bound, bound)
    x = jax.random.normal(kx, (batch, n_feature), jnp.float32)
    # Elementwise f32 reference (no MXU) to compare against.
    y_ref = jnp.sum(x * weight, axis=1, keepdims=True) + bias

    # 1) fused row-major path (no transpose), auto tile -> grid of >= 2 steps
    y = linear_net_forward(x, weight, bias)
    jax.block_until_ready(y)
    assert y.shape == (batch, 1)
    assert jnp.allclose(y, y_ref, atol=1e-5, rtol=1e-5), "fused auto-tile mismatch"

    # 2) fused path with a forced single-block tile (covers the padded batch)
    y1 = linear_net_forward(x, weight, bias, row_tile=16)
    jax.block_until_ready(y1)
    assert jnp.allclose(y1, y_ref, atol=1e-5, rtol=1e-5), "fused single-block mismatch"

    # 3) general-F feature-major path (128 % 3 != 0): memory-optimal entry
    #    point that consumes (F, N) data directly, no per-call transpose.
    n_feature2, batch2 = 3, 200
    bound2 = 1.0 / (n_feature2 ** 0.5)
    weight2 = jax.random.uniform(kw2, (1, n_feature2), jnp.float32, -bound2, bound2)
    bias2 = jax.random.uniform(kb2, (1,), jnp.float32, -bound2, bound2)
    x2 = jax.random.normal(kx2, (batch2, n_feature2), jnp.float32)
    y2_ref = jnp.sum(x2 * weight2, axis=1, keepdims=True) + bias2
    y2 = linear_net_forward_feature_major(x2.T, weight2, bias2)
    jax.block_until_ready(y2)
    assert y2.shape == (batch2, 1)
    assert jnp.allclose(y2, y2_ref, atol=1e-5, rtol=1e-5), "feature-major mismatch"

    print("KERNEL_OK")
</pallas_src>

<mosaic_0001>
module attributes {stable_mosaic.version = 11 : i64} {
  func.func @_fused_kernel(%arg0: i32, %arg1: memref<8x128xf32, #tpu.memory_space<vmem>>, %arg2: memref<128x64xf32, #tpu.memory_space<vmem>>, %arg3: memref<1xf32, #tpu.memory_space<smem>>, %arg4: memref<8x64xf32, #tpu.memory_space<vmem>>) attributes {dimension_semantics = [#tpu.dimension_semantics<parallel>], iteration_bounds = array<i64: 2>, scalar_prefetch = 0 : i64, scratch_operands = 0 : i64, tpu.core_type = #tpu.core_type<tc>, window_params = [{transform_indices = @transform_0, window_bounds = array<i64: 8, 128>}, {pipeline_mode = #tpu.pipeline_mode<synchronous>, transform_indices = @transform_1, window_bounds = array<i64: 128, 64>}, {transform_indices = @transform_2, window_bounds = array<i64: 1>}, {transform_indices = @transform_3, window_bounds = array<i64: 8, 64>}]} {
    %c0 = arith.constant 0 : index
    %c0_0 = arith.constant 0 : index
    %0 = vector.load %arg1[%c0, %c0_0] : memref<8x128xf32, #tpu.memory_space<vmem>>, vector<8x128xf32>
    %c0_1 = arith.constant 0 : index
    %c0_2 = arith.constant 0 : index
    %1 = vector.load %arg2[%c0_1, %c0_2] : memref<128x64xf32, #tpu.memory_space<vmem>>, vector<128x64xf32>
    %cst = arith.constant dense<0.000000e+00> : vector<8x64xf32>
    %2 = tpu.matmul %0, %1, %cst {dimension_numbers = #tpu.dot_dimension_numbers<[1], [0], [0], [1], [0, 0, 1, 1], [], []>, precision = #tpu.contract_precision<fp32>} : vector<8x128xf32>, vector<128x64xf32>, vector<8x64xf32> -> vector<8x64xf32>
    %c0_3 = arith.constant 0 : index
    %3 = memref.load %arg3[%c0_3] : memref<1xf32, #tpu.memory_space<smem>>
    %4 = vector.broadcast %3 : f32 to vector<8x64xf32>
    %5 = arith.addf %2, %4 : vector<8x64xf32>
    %c0_4 = arith.constant 0 : index
    %c0_5 = arith.constant 0 : index
    %6 = vector.load %arg4[%c0_4, %c0_5] : memref<8x64xf32, #tpu.memory_space<vmem>>, vector<8x64xf32>
    tpu.vector_store %arg4[%c0_4, %c0_5], %5 {strides = array<i32>} : memref<8x64xf32, #tpu.memory_space<vmem>>, vector<8x64xf32>,
    return
  }
  func.func @transform_0(%arg0: i32) -> (i32, i32) {
    %c0_i32 = arith.constant 0 : i32
    %c0_i32_0 = arith.constant 0 : i32
    return %arg0, %c0_i32 : i32, i32
  }
  func.func @transform_1(%arg0: i32) -> (i32, i32) {
    %c0_i32 = arith.constant 0 : i32
    %c0_i32_0 = arith.constant 0 : i32
    %c0_i32_1 = arith.constant 0 : i32
    return %c0_i32, %c0_i32_0 : i32, i32
  }
  func.func @transform_2(%arg0: i32) -> i32 {
    %c0_i32 = arith.constant 0 : i32
    %c0_i32_0 = arith.constant 0 : i32
    return %c0_i32 : i32
  }
  func.func @transform_3(%arg0: i32) -> (i32, i32) {
    %c0_i32 = arith.constant 0 : i32
    %c0_i32_0 = arith.constant 0 : i32
    return %arg0, %c0_i32 : i32, i32
  }
}

</mosaic_0001>

<bundles_post_ra>
// kernel: tpu_custom_call.1
= control target key start
LH: loop header
LB: loop body
LE: loop exit
PB: predicated region body
PF: predicated region fallthrough
CT: control target
= control target key end

     0   :  { %s1922_s0 = inlined_call_operand.vmem [shape: f32[16,128], index: 0, kind: input, shape index: {}]   ;;  %s1923_s1 = inlined_call_operand.vmem [shape: f32[128,64], index: 1, kind: input, shape index: {}]   ;;  %s1924_s2 = inlined_call_operand.<no memory space> [shape: f32[1], index: 2, kind: input, shape index: {}]   ;;  %s1925_s3 = inlined_call_operand.hbm [shape: f32[16,64], index: 3, kind: output, shape index: {}]  }
   0x1   :  { %8 = sst [smem:[#allocation2]] %s1924_s2 }
   0x2   :  { %9 = vsyncpa [#allocation4], 0 }
   0x3   :  { %11 = vsyncpa [#allocation4 + $0x1], 0  ;;  %s1511_s14 = smov 0   ;;  %s1513_s15 = smov 0  }
   0x4   :  { %s1515_s16 = smov 0   ;;  %s1517_s17 = smov 0  }
   0x5 LB: > { %s1532_s2 = sadd.s32 4294967295, %s1482_s17   ;;  %s902_s18 = sadd.s32 4294967294, %s1482_s17   ;;  %s1482_s17 = sphi %s1517_s17, %s1931_s17   ;;  %s1478_s16 = sphi %s1515_s16, %s1930_s16   ;;  %s1474_s15 = sphi %s1513_s15, %s1929_s15   ;;  %s1470_s14 = sphi %s1511_s14, %s1928_s14  }
   0x6   : > { %s1536_s19 = sadd.s32 1, %s1482_s17   ;;  %s92_s20 = sadd.s32 1, %s1478_s16 }
   0x7   : > { %s89_s21 = ssub.s32 %s1482_s17, %s1536_s19  ;;  %p102_p0 = scmp.ne.s32.totalorder %s1478_s16, %s1474_s15 }
   0x8   : > { %p90_p1 = scmp.eq.s32.totalorder %s89_s21, 0  ;;  %p103_p2 = scmp.eq.s32.totalorder %s1532_s2, 1 }
   0x9   : > { %p108_p3 = scmp.ne.s32.totalorder %s1474_s15, %s1470_s14  ;;  %p109_p4 = scmp.eq.s32.totalorder %s902_s18, 1 }
   0xa   : > { %s1547_s22 = scalar_select %p90_p1, %s1478_s16, %s92_s20  }
   0xb   : > { %p1549_p5 = por %p103_p2, %p102_p0  ;;  %p1553_p6 = por %p109_p4, %p108_p3 }
   0xc   : > { %p905_p7 = scmp.ge.s32.totalorder %s1482_s17, 1  ;;  %p140_p8 = scmp.lt.s32.totalorder %s1482_s17, 3 }
   0xe   : > { %p141_p9 = pnand %p905_p7, %p140_p8 }
   0xf   : > { %v168_v0 = vld [vmem:[%s1923_s1] sm:$0xff] (!%p141_p9)  ;;  %v169_v1 = vld [vmem:[%s1923_s1 + $0x8] sm:$0xff] (!%p141_p9)  ;;  %v170_v2 = vld [vmem:[%s1923_s1 + $0x10] sm:$0xff] (!%p141_p9)  ;;  %v1484_v3 = vmov (!%p141_p9), 0.0|0.0   ;;  %vm1485_vm0 = vmmov (!%p141_p9), 0   ;;  %v1486_v11 = vmov (!%p141_p9), 0.0  }
  0x10   : > { %144 = sbr.rel (%p141_p9) target bundleno = 345 (0x159), region = 32  ;;  %1224 = vmatprep.subr.bf16.mxu1 (!%p141_p9), %v1484_v3  ;;  %1296 = vmatprep.subr.bf16.mxu0 (!%p141_p9), %v1484_v3  ;;  %v187_v4 = vand.u32 (!%p141_p9), 4294901760, %v168_v0  ;;  %v190_v5 = vand.u32 (!%p141_p9), 4294901760, %v169_v1  ;;  %v171_v6 = vld [vmem:[%s1923_s1 + $0x18] sm:$0xff] (!%p141_p9)  ;;  %v193_v7 = vand.u32 (!%p141_p9), 4294901760, %v170_v2  ;;  %v1576_v9 = vld [vmem:[%s1923_s1 + $0x20] sm:$0xff] (!%p141_p9) }
  0x11   : > { %v196_v8 = vand.u32 (!%p141_p9), 4294901760, %v171_v6  ;;  %v1581_v10 = vld [vmem:[%s1923_s1 + $0x28] sm:$0xff] (!%p141_p9)  ;;  %1046 = vmatprep.mubr.msk.f32.mxu1 (!%p141_p9), %vm1485_vm0, %v1486_v11  ;;  %1151 = vmatprep.mubr.msk.f32.mxu0 (!%p141_p9), %vm1485_vm0, %v1486_v11  ;;  %p163_p10 = scmp.lt.s32.totalorder (!%p141_p9), %s1532_s2, 1  ;;  %v199_v14 = vand.u32 (!%p141_p9), 4294901760, %v1576_v9  ;;  %v1602_v16 = vld [vmem:[%s1923_s1 + $0x30] sm:$0xff] (!%p141_p9)  ;;  %v1607_v17 = vld [vmem:[%s1923_s1 + $0x38] sm:$0xff] (!%p141_p9) }
  0x12   : > { %v1587_v12 = vpack.c.bf16 (!%p141_p9), %v190_v5, %v187_v4  ;;  %v202_v15 = vand.u32 (!%p141_p9), 4294901760, %v1581_v10  ;;  %v205_v19 = vand.u32 (!%p141_p9), 4294901760, %v1602_v16  ;;  %v208_v20 = vand.u32 (!%p141_p9), 4294901760, %v1607_v17  ;;  %v1620_v21 = vld [vmem:[%s1923_s1 + $0x40] sm:$0xff] (!%p141_p9)  ;;  %v1625_v22 = vld [vmem:[%s1923_s1 + $0x48] sm:$0xff] (!%p141_p9)  ;;  %v1641_v27 = vld [vmem:[%s1923_s1 + $0x50] sm:$0xff] (!%p141_p9) }
  0x13   : > { %v1592_v13 = vpack.c.bf16 (!%p141_p9), %v196_v8, %v193_v7  ;;  %v211_v24 = vand.u32 (!%p141_p9), 4294901760, %v1620_v21  ;;  %v214_v25 = vand.u32 (!%p141_p9), 4294901760, %v1625_v22  ;;  %v1646_v28 = vld [vmem:[%s1923_s1 + $0x58] sm:$0xff] (!%p141_p9)  ;;  %v1648_v29 = vsub.f32 (!%p141_p9), %v168_v0, %v187_v4  ;;  %v1663_v35 = vld [vmem:[%s1923_s1 + $0x60] sm:$0xff] (!%p141_p9)  ;;  %v1670_v36 = vld [vmem:[%s1923_s1 + $0x68] sm:$0xff] (!%p141_p9)  ;;  %s184_s21 = sld [smem:[#allocation2]] (!%p141_p9) }
  0x14   : > { %1226 = vmatpush3.bf16.msra.mxu1 (!%p141_p9), %v1587_v12  ;;  %1298 = vmatpush3.bf16.msra.mxu0 (!%p141_p9), %v1587_v12  ;;  %v1611_v18 = vpack.c.bf16 (!%p141_p9), %v202_v15, %v199_v14  ;;  %v1632_v23 = vpack.c.bf16 (!%p141_p9), %v208_v20, %v205_v19  ;;  %v1652_v31 = vsub.f32 (!%p141_p9), %v169_v1, %v190_v5  ;;  %v217_v33 = vand.u32 (!%p141_p9), 4294901760, %v1641_v27  ;;  %v1692_v43 = vld [vmem:[%s1923_s1 + $0x70] sm:$0xff] (!%p141_p9)  ;;  %v1697_v44 = vld [vmem:[%s1923_s1 + $0x78] sm:$0xff] (!%p141_p9)  ;;  %s160_s25 = sand.u32 (!%p141_p9), 1, %s1474_s15   ;;  %s909_s27 = sshll.u32 (!%p141_p9), %s1532_s2, 7 }
  0x15   : > { %1227 = vmatprep.subr.bf16.mxu1 (!%p141_p9), %v1484_v3  ;;  %1299 = vmatprep.subr.bf16.mxu0 (!%p141_p9), %v1484_v3  ;;  %v1656_v32 = vpack.c.bf16 (!%p141_p9), %v214_v25, %v211_v24  ;;  %v220_v34 = vand.u32 (!%p141_p9), 4294901760, %v1646_v28  ;;  %v1672_v37 = vsub.f32 (!%p141_p9), %v170_v2, %v193_v7  ;;  %v1674_v38 = vsub.f32 (!%p141_p9), %v171_v6, %v196_v8  ;;  %s906_s26 = sshll.u32 (!%p141_p9), %s160_s25, 3  ;;  %s1880_s5 = scalar_lea.hbm (!%p141_p9), %s1925_s3, %s909_s27 }
  0x16   : > { %v223_v39 = vand.u32 (!%p141_p9), 4294901760, %v1663_v35  ;;  %v226_v42 = vand.u32 (!%p141_p9), 4294901760, %v1670_v36  ;;  %v280_v45 = vand.u32 (!%p141_p9), 4294901760, %v1648_v29  ;;  %v287_v46 = vand.u32 (!%p141_p9), 4294901760, %v1652_v31  ;;  %s162_s28 = scalar_lea.vmem (!%p141_p9), [#allocation3], %s906_s26  ;;  %s830_s6 = scalar_lea.sflag (!%p141_p9), [#allocation4], %s160_s25 }
  0x17   : > { %s164_s10 = scalar_select %p163_p10, %s1532_s2, 1  ;;  %v1686_v41 = vpack.c.bf16 %v220_v34, %v217_v33  ;;  %v1704_v47 = vsub.f32 %v1576_v9, %v199_v14  ;;  %v1707_v48 = vsub.f32 %v1581_v10, %v202_v15  ;;  %v229_v49 = vand.u32 4294901760, %v1692_v43 }
  0x18   : > { %1229 = vmatpush3.bf16.msra.mxu1 %v1592_v13  ;;  %1301 = vmatpush3.bf16.msra.mxu0 %v1592_v13  ;;  %v232_v50 = vand.u32 4294901760, %v1697_v44  ;;  %v294_v52 = vand.u32 4294901760, %v1672_v37  ;;  %v1719_v53 = vpack.c.bf16 %v226_v42, %v223_v39  ;;  %v281_v54 = vsub.f32 %v1648_v29, %v280_v45  ;;  %s843_s29 = sshll.u32 %s162_s28, 4  ;;  %s1487_s7 = smov [#allocation3]   ;;  %s1882_s29 = int_to_ptr.vmem [resolvable:$true] %s843_s29 }
  0x19   : > { %s907_s20 = sshll.u32 %s164_s10, 3  ;;  %1230 = vmatprep.subr.bf16.mxu1 %v1484_v3  ;;  %1302 = vmatprep.subr.bf16.mxu0 %v1484_v3  ;;  %v288_v55 = vsub.f32 %v1652_v31, %v287_v46  ;;  %v301_v56 = vand.u32 4294901760, %v1674_v38  ;;  %v1727_v57 = vsub.f32 %v1602_v16, %v205_v19  ;;  %v1730_v58 = vsub.f32 %v1607_v17, %v208_v20  ;;  %s1420_s2 = scalar_lea.vmem %s1882_s29, 128 }
  0x1a   : > { %s166_s30 = scalar_lea.vmem %s1922_s0, %s907_s20  ;;  %v295_v60 = vsub.f32 %v1672_v37, %v294_v52  ;;  %v308_v61 = vand.u32 4294901760, %v1704_v47  ;;  %v315_v62 = vand.u32 4294901760, %v1707_v48  ;;  %v1742_v63 = vpack.c.bf16 %v232_v50, %v229_v49  ;;  %p1421_p11 = scmp.ne.s32.totalorder %s1882_s29, %s1420_s2 }
  0x1b   : > { %v167_v26 = vld [vmem:[%s166_s30] sm:$0xff]  ;;  %v282_v0 = vand.u32 4294901760, %v281_v54  ;;  %v289_v1 = vand.u32 4294901760, %v288_v55  ;;  %v302_v2 = vsub.f32 %v1674_v38, %v301_v56  ;;  %v1748_v4 = vsub.f32 %v1620_v21, %v211_v24  ;;  %s1424_s8 = sshll.u32 %s1487_s7, 4  ;;  %s1425_s8 = int_to_ptr.vmem [resolvable:$false] %s1424_s8 }
  0x1c   : > { %1232 = vmatpush3.bf16.msra.mxu1 %v1611_v18  ;;  %1304 = vmatpush3.bf16.msra.mxu0 %v1611_v18  ;;  %v1650_v30 = vand.u32 4294901760, %v167_v26  ;;  %v1751_v5 = vsub.f32 %v1625_v22, %v214_v25  ;;  %v1321_v6 = vpack.c.bf16 %v287_v46, %v280_v45  ;;  %v296_v8 = vand.u32 4294901760, %v295_v60  ;;  %p1422_p12 = pnand %p1421_p11, %p1549_p5  ;;  %s1426_s9 = scalar_lea.vmem %s1425_s8, 256 }
  0x1d   : > { %1233 = vmatprep.subr.bf16.mxu1 %v1484_v3  ;;  %1305 = vmatprep.subr.bf16.mxu0 %v1484_v3  ;;  %v309_v9 = vsub.f32 %v1704_v47, %v308_v61  ;;  %v316_v10 = vsub.f32 %v1707_v48, %v315_v62  ;;  %v1249_v14 = vpack.c.bf16 %v289_v1, %v282_v0  ;;  %v303_v15 = vand.u32 4294901760, %v302_v2  ;;  %p1427_p0 = scmp.lt.s32.totalorder %s1882_s29, %s1425_s8  ;;  %p1428_p1 = scmp.lt.s32.totalorder %s1426_s9, %s1420_s2 }
  0x1e   : > { %v1678_v40 = vsub.f32 %v167_v26, %v1650_v30  ;;  %v322_v16 = vand.u32 4294901760, %v1727_v57  ;;  %v329_v17 = vand.u32 4294901760, %v1730_v58  ;;  %v1764_v19 = vsub.f32 %v1641_v27, %v217_v33  ;;  %p1423_p13 = pneg %p1422_p12 }
  0x1f   : > { %v1769_v20 = vsub.f32 %v1646_v28, %v220_v34  ;;  %v1324_v21 = vpack.c.bf16 %v301_v56, %v294_v52  ;;  %v310_v22 = vand.u32 4294901760, %v309_v9  ;;  %v317_v24 = vand.u32 4294901760, %v316_v10  ;;  %p1429_p2 = por %p1428_p1, %p1427_p0 }
  0x20   : > { %1235 = vmatpush3.bf16.msra.mxu1 %v1632_v23  ;;  %1307 = vmatpush3.bf16.msra.mxu0 %v1632_v23  ;;  %v269_v51 = vand.u32 4294901760, %v1678_v40  ;;  %v336_v25 = vand.u32 4294901760, %v1748_v4  ;;  %v1252_v26 = vpack.c.bf16 %v303_v15, %v296_v8  ;;  %v323_v45 = vsub.f32 %v1727_v57, %v322_v16 }
  0x21   : > { %1236 = vmatprep.subr.bf16.mxu1 %v1484_v3  ;;  %1308 = vmatprep.subr.bf16.mxu0 %v1484_v3  ;;  %v330_v27 = vsub.f32 %v1730_v58, %v329_v17  ;;  %v343_v33 = vand.u32 4294901760, %v1751_v5  ;;  %v1780_v28 = vsub.f32 %v1663_v35, %v223_v39  ;;  %v1785_v34 = vsub.f32 %v1670_v36, %v226_v42  ;;  %p1430_p3 = pnand %p1429_p2, %p1423_p13 }
  0x22   : > { %v270_v59 = vsub.f32 %v1678_v40, %v269_v51  ;;  %v1255_v46 = vpack.c.bf16 %v317_v24, %v310_v22  ;;  %v337_v52 = vsub.f32 %v1748_v4, %v336_v25  ;;  %v350_v54 = vand.u32 4294901760, %v1764_v19 }
  0x23   : > { %v324_v35 = vand.u32 4294901760, %v323_v45  ;;  %v331_v39 = vand.u32 4294901760, %v330_v27  ;;  %v344_v55 = vsub.f32 %v1751_v5, %v343_v33  ;;  %v357_v36 = vand.u32 4294901760, %v1769_v20 }
  0x24   : > { %1238 = vmatpush3.bf16.msra.mxu1 %v1656_v32  ;;  %1310 = vmatpush3.bf16.msra.mxu0 %v1656_v32  ;;  %v271_v7 = vand.u32 4294901760, %v270_v59  ;;  %v1800_v42 = vsub.f32 %v1692_v43, %v229_v49  ;;  %v1805_v56 = vsub.f32 %v1697_v44, %v232_v50  ;;  %v1330_v59 = vpack.c.bf16 %v329_v17, %v322_v16 }
  0x25   : > { %1239 = vmatprep.subr.bf16.mxu1 %v1484_v3  ;;  %1311 = vmatprep.subr.bf16.mxu0 %v1484_v3  ;;  %v338_v60 = vand.u32 4294901760, %v337_v52  ;;  %v1258_v0 = vpack.c.bf16 %v331_v39, %v324_v35  ;;  %v345_v1 = vand.u32 4294901760, %v344_v55  ;;  %v358_v2 = vsub.f32 %v1769_v20, %v357_v36 }
  0x26   : > { %v371_v43 = vand.u32 4294901760, %v1785_v34  ;;  %v1333_v44 = vpack.c.bf16 %v343_v33, %v336_v25  ;;  %v385_v10 = vand.u32 4294901760, %v1805_v56  ;;  %vm827_vm1 = vcmask 523264  }
  0x27   : > { %v359_v8 = vand.u32 4294901760, %v358_v2 }
  0x28   : > { %1241 = vmatpush3.bf16.msra.mxu1 %v1686_v41  ;;  %1313 = vmatpush3.bf16.msra.mxu0 %v1686_v41  ;;  %v372_v9 = vsub.f32 %v1785_v34, %v371_v43  ;;  %v386_v22 = vsub.f32 %v1805_v56, %v385_v10 }
  0x29   : > { %1242 = vmatprep.subr.bf16.mxu1 %v1484_v3  ;;  %1314 = vmatprep.subr.bf16.mxu0 %v1484_v3 }
  0x2a   : > { %v373_v17 = vand.u32 4294901760, %v372_v9  ;;  %v387_v45 = vand.u32 4294901760, %v386_v22 }
  0x2c   : > { %1244 = vmatpush3.bf16.msra.mxu1 %v1719_v53  ;;  %1316 = vmatpush3.bf16.msra.mxu0 %v1719_v53 }
  0x2d   : > { %1245 = vmatprep.subr.bf16.mxu1 %v1484_v3  ;;  %1317 = vmatprep.subr.bf16.mxu0 %v1484_v3 }
  0x30   : > { %1247 = vmatpush3.bf16.msra.mxu1 %v1742_v63  ;;  %1319 = vmatpush3.bf16.msra.mxu0 %v1742_v63 }
  0x31   : > { %1248 = vmatprep.subr.bf16.mxu1 %v1484_v3  ;;  %1320 = vmatprep.subr.bf16.mxu0 %v1484_v3 }
  0x33   : > { %1047 = vmatmul.mubr.f32.vlgmr.msra.gmra.mrb[0].mxu1 %v271_v7  ;;  %1152 = vmatmul.mubr.f32.vlgmr.msra.gmra.mrb[0].mxu0 %v269_v51  ;;  %v1327_v51 = vpack.c.bf16 %v315_v62, %v308_v61  ;;  %v351_v61 = vsub.f32 %v1764_v19, %v350_v54  ;;  %v364_v62 = vand.u32 4294901760, %v1780_v28  ;;  %v1261_v7 = vpack.c.bf16 %v345_v1, %v338_v60 }
  0x34   : > { %1250 = vmatpush3.bf16.msra.mxu1 %v1249_v14  ;;  %1322 = vmatpush3.bf16.msra.mxu0 %v1321_v6  ;;  %v378_v6 = vand.u32 4294901760, %v1800_v42  ;;  %v1336_v14 = vpack.c.bf16 %v357_v36, %v350_v54 }
  0x35   : > { %1251 = vmatprep.subr.bf16.mxu1 %v1484_v3  ;;  %1323 = vmatprep.subr.bf16.mxu0 %v1484_v3  ;;  %v352_v49 = vand.u32 4294901760, %v351_v61  ;;  %v365_v50 = vsub.f32 %v1780_v28, %v364_v62  ;;  %v1339_v25 = vpack.c.bf16 %v371_v43, %v364_v62 }
  0x36   : > { %1081 = vmatprep.mubr.msk.f32.mxu1 %vm1485_vm0, %v1486_v11  ;;  %1186 = vmatprep.mubr.msk.f32.mxu0 %vm1485_vm0, %v1486_v11  ;;  %v1342_v33 = vpack.c.bf16 %v385_v10, %v378_v6 }
  0x37   : > { %v366_v15 = vand.u32 4294901760, %v365_v50  ;;  %v1264_v16 = vpack.c.bf16 %v359_v8, %v352_v49 }
  0x38   : > { %1253 = vmatpush3.bf16.msra.mxu1 %v1252_v26  ;;  %1325 = vmatpush3.bf16.msra.mxu0 %v1324_v21  ;;  %v379_v21 = vsub.f32 %v1800_v42, %v378_v6 }
  0x39   : > { %1254 = vmatprep.subr.bf16.mxu1 %v1484_v3  ;;  %1326 = vmatprep.subr.bf16.mxu0 %v1484_v3  ;;  %v1267_v24 = vpack.c.bf16 %v373_v17, %v366_v15 }
  0x3a   : > { %v380_v26 = vand.u32 4294901760, %v379_v21 }
  0x3c   : > { %1256 = vmatpush3.bf16.msra.mxu1 %v1255_v46  ;;  %1328 = vmatpush3.bf16.msra.mxu0 %v1327_v51  ;;  %v1270_v27 = vpack.c.bf16 %v387_v45, %v380_v26  ;;  %v1273_v46 = vpack.c.bf16 %v1652_v31, %v1648_v29  ;;  %v1276_v51 = vpack.c.bf16 %v1674_v38, %v1672_v37  ;;  %v185_v31 = vstv %s184_s21 }
  0x3d   : > { %1257 = vmatprep.subr.bf16.mxu1 %v1484_v3  ;;  %1329 = vmatprep.subr.bf16.mxu0 %v1484_v3  ;;  %v1279_v29 = vpack.c.bf16 %v1707_v48, %v1704_v47 }
  0x40   : > { %1259 = vmatpush3.bf16.msra.mxu1 %v1258_v0  ;;  %1331 = vmatpush3.bf16.msra.mxu0 %v1330_v59 }
  0x41   : > { %1260 = vmatprep.subr.bf16.mxu1 %v1484_v3  ;;  %1332 = vmatprep.subr.bf16.mxu0 %v1484_v3 }
  0x44   : > { %1262 = vmatpush3.bf16.msra.mxu1 %v1261_v7  ;;  %1334 = vmatpush3.bf16.msra.mxu0 %v1333_v44 }
  0x45   : > { %1263 = vmatprep.subr.bf16.mxu1 %v1484_v3  ;;  %1335 = vmatprep.subr.bf16.mxu0 %v1484_v3 }
  0x48   : > { %1265 = vmatpush3.bf16.msra.mxu1 %v1264_v16  ;;  %1337 = vmatpush3.bf16.msra.mxu0 %v1336_v14 }
  0x49   : > { %1266 = vmatprep.subr.bf16.mxu1 %v1484_v3  ;;  %1338 = vmatprep.subr.bf16.mxu0 %v1484_v3 }
  0x4c   : > { %1268 = vmatpush3.bf16.msra.mxu1 %v1267_v24  ;;  %1340 = vmatpush3.bf16.msra.mxu0 %v1339_v25 }
  0x4d   : > { %1269 = vmatprep.subr.bf16.mxu1 %v1484_v3  ;;  %1341 = vmatprep.subr.bf16.mxu0 %v1484_v3 }
  0x50   : > { %1271 = vmatpush3.bf16.msra.mxu1 %v1270_v27  ;;  %1343 = vmatpush3.bf16.msra.mxu0 %v1342_v33 }
  0x51   : > { %1272 = vmatprep.subr.bf16.mxu1 %v1484_v3  ;;  %1344 = vmatprep.subr.bf16.mxu0 %v1484_v3 }
  0x53   : > { %1082 = vmatmul.mubr.f32.vlgmr.msra.gmra.mrb[0].mxu1 %v1650_v30  ;;  %1187 = vmatmul.mubr.f32.vlgmr.msra.gmra.mrb[0].mxu0 %v1650_v30 }
  0x54   : > { %1274 = vmatpush3.bf16.msra.mxu1 %v1273_v46  ;;  %1346 = vmatpush3.bf16.msra.mxu0 %v1587_v12  ;;  %v1282_v12 = vpack.c.bf16 %v1730_v58, %v1727_v57 }
  0x55   : > { %1275 = vmatprep.subr.bf16.mxu1 %v1484_v3  ;;  %1347 = vmatprep.subr.bf16.mxu0 %v1484_v3 }
  0x56   : > { %1116 = vmatprep.mubr.msk.f32.mxu1 %vm1485_vm0, %v1486_v11  ;;  %1221 = vmatprep.mubr.msk.f32.mxu0 %vm1485_vm0, %v1486_v11  ;;  %v1285_v11 = vpack.c.bf16 %v1751_v5, %v1748_v4 }
  0x58   : > { %1277 = vmatpush3.bf16.msra.mxu1 %v1276_v51  ;;  %1349 = vmatpush3.bf16.msra.mxu0 %v1592_v13  ;;  %v1288_v13 = vpack.c.bf16 %v1769_v20, %v1764_v19 }
  0x59   : > { %1278 = vmatprep.subr.bf16.mxu1 %v1484_v3  ;;  %1350 = vmatprep.subr.bf16.mxu0 %v1484_v3 }
  0x5c   : > { %1280 = vmatpush3.bf16.msra.mxu1 %v1279_v29  ;;  %1352 = vmatpush3.bf16.msra.mxu0 %v1611_v18  ;;  %v1291_v18 = vpack.c.bf16 %v1785_v34, %v1780_v28 }
  0x5d   : > { %1281 = vmatprep.subr.bf16.mxu1 %v1484_v3  ;;  %1353 = vmatprep.subr.bf16.mxu0 %v1484_v3 }
  0x60   : > { %1283 = vmatpush3.bf16.msra.mxu1 %v1282_v12  ;;  %1355 = vmatpush3.bf16.msra.mxu0 %v1632_v23  ;;  %v1294_v23 = vpack.c.bf16 %v1805_v56, %v1800_v42 }
  0x61   : > { %1284 = vmatprep.subr.bf16.mxu1 %v1484_v3  ;;  %1356 = vmatprep.subr.bf16.mxu0 %v1484_v3 }
  0x64   : > { %1286 = vmatpush3.bf16.msra.mxu1 %v1285_v11  ;;  %1358 = vmatpush3.bf16.msra.mxu0 %v1656_v32 }
  0x65   : > { %1287 = vmatprep.subr.bf16.mxu1 %v1484_v3  ;;  %1359 = vmatprep.subr.bf16.mxu0 %v1484_v3 }
  0x68   : > { %1289 = vmatpush3.bf16.msra.mxu1 %v1288_v13  ;;  %1361 = vmatpush3.bf16.msra.mxu0 %v1686_v41 }
  0x69   : > { %1290 = vmatprep.subr.bf16.mxu1 %v1484_v3  ;;  %1362 = vmatprep.subr.bf16.mxu0 %v1484_v3 }
  0x6c   : > { %1292 = vmatpush3.bf16.msra.mxu1 %v1291_v18  ;;  %1364 = vmatpush3.bf16.msra.mxu0 %v1719_v53 }
  0x6d   : > { %1293 = vmatprep.subr.bf16.mxu1 %v1484_v3  ;;  %1365 = vmatprep.subr.bf16.mxu0 %v1484_v3 }
  0x70   : > { %1295 = vmatpush3.bf16.msra.mxu1 %v1294_v23  ;;  %1367 = vmatpush3.bf16.msra.mxu0 %v1742_v63 }
  0x73   : > { %1117 = vmatmul.mubr.f32.vlgmr.msra.gmra.mrb[0].mxu1 %v1678_v40  ;;  %1222 = vmatmul.mubr.f32.vlgmr.msra.gmra.mrb[0].mxu0 %v1650_v30 }
 0x146   : > { %v528_v32 = vpop.f32.mrb[0].mxu1  ;;  %v823_v37 = vpop.f32.mrb[0].mxu0 }
 0x147   : > { %v1368_v38 = vadd.f32 %v528_v32, %v185_v31  ;;  %v1118_v41 = vpop.f32.mrb[1].mxu1  ;;  %v1223_v3 = vpop.f32.mrb[1].mxu0 }
 0x149   : > { %v1369_v47 = vadd.f32 %v1368_v38, %v823_v37 }
 0x14b   : > { %828 = vst.msk [vmem:[%s162_s28] sm:$0xff] %vm827_vm1, %v1369_v47 }
 0x14c   : > { %1433 = shalt.err (!%p1430_p3)
}
 0x14d   : > { %s1434_s10 = scalar_lea.hbm %s1880_s5, 128  ;;  %s1438_s13 = scalar_lea.hbm %s1925_s3, 256 }
 0x14e   : > { %p1435_p4 = scmp.ne.s32.totalorder %s1880_s5, %s1434_s10  ;;  %p1439_p9 = scmp.lt.u32.totalorder %s1880_s5, %s1925_s3 }
 0x14f   : > { %p1440_p10 = scmp.lt.u32.totalorder %s1438_s13, %s1434_s10  ;;  %p1442_p12 = scmp.lt.u32.totalorder %s1434_s10, %s1880_s5 }
 0x150   : > { %p1436_p7 = pnand %p1435_p4, %p1549_p5 }
 0x151   : > { %p1441_p11 = por %p1440_p10, %p1439_p9 }
 0x152   : > { %p1437_p8 = pneg %p1436_p7 }
 0x153   : > { %p1443_p13 = por %p1442_p12, %p1441_p11 }
 0x155   : > { %p1444_p0 = pnand %p1443_p13, %p1437_p8 }
 0x157   : > { %1447 = shalt.err (!%p1444_p0)
}
 0x158   : > { %1378 = dma.vmem_to_hbm [thread:$0]  (%p1549_p5), %s1882_s29, 128, %s1880_s5, %s830_s6  }
 0x159 PF: > { %p1384_p1 = scmp.ge.s32.totalorder %s1482_s17, 2  ;;  %s855_s21 = sand.u32 1, %s1470_s14  }
 0x15a   : > { %s856_s25 = scalar_lea.sflag [#allocation4], %s855_s21 }
 0x15b   : > { %p1381_p2 = pnand %p1384_p1, %p1553_p6 }
 0x15d   : > { %1465 = dma.done.wait (!%p1381_p2), %s856_s25, 128  }
 0x15e   : > { %1467 = vsyncadd (!%p1381_p2), %s856_s25, 4294967168  ;;  %p14_p3 = scmp.ge.s32.totalorder %s1536_s19, 4   ;;  %s1928_s14 = smov %s1474_s15 }
 0x15f   : > { %s1929_s15 = smov %s1478_s16  ;;  %s1930_s16 = smov %s1547_s22 }
 0x160   : > { %s1931_s17 = smov %s1536_s19  ;;  %16 = sbr.rel (!%p14_p3) target bundleno = 5 (0x5), region = 67 }
 0x167   :  { %861 = vsyncpa [#allocation4], 1 }
 0x168   :  { %863 = vsyncpa [#allocation4 + $0x1], 1 }

</bundles_post_ra>
